<compile_context>
chip_gen: v6e
topology: v6e:2x2x1
jax: 0.10.0
libtpu: 0.0.40
codegen_flags: <defaults>
</compile_context>

<pallas_src>
import functools
import numpy as np

import jax
import jax.numpy as jnp
from jax import lax
from jax.experimental import pallas as pl
from jax.experimental.pallas import tpu as pltpu


WEIGHT_DTYPE = jnp.bfloat16     # storage dtype of the FC weights (f32 accumulate)
MAX_TK = 4352                   # K-tile cap: 2-buffered bf16 weight tiles ~18 MB
MAX_TN = 1024                   # N-tile cap
VMEM_LIMIT_BYTES = 48 * 1024 * 1024   # > v5e's 16 MiB default, < v7x's 64 MiB


def _round_up(a, m):
    return (a + m - 1) // m * m


# ----------------------------------------------------------------------------
# Conv1d + ReLU + MaxPool1d(2,2) kernel (stride=1).  <1% of runtime.
#
# The padded input is split (in JAX glue) into even/odd samples so both the
# conv taps and the 2-wide max-pool reduce to contiguous lane slices:
#   out[o, 2j]   = sum_{c,k} xpad[c, 2j+k]   * w[o,c,k]
#   out[o, 2j+1] = sum_{c,k} xpad[c, 2j+1+k] * w[o,c,k]
#   pooled[o, j] = relu(max(out[o,2j], out[o,2j+1]))     (bias folded in)
# ----------------------------------------------------------------------------
def _conv_relu_pool_kernel(K, xe_ref, xo_ref, w_ref, b_ref, out_ref):
    n_taps, c_out, _ = w_ref.shape
    c_in = n_taps // K
    l_pool = out_ref.shape[2]

    acc_e = jnp.zeros((c_out, l_pool), jnp.float32)
    acc_o = jnp.zeros((c_out, l_pool), jnp.float32)

    for c in range(c_in):
        for k in range(K):
            wk = w_ref[c * K + k]                      # (C_out, 1)
            h = k // 2
            if k % 2 == 0:
                se = xe_ref[0, c, pl.ds(h, l_pool)]        # even outputs
                so = xo_ref[0, c, pl.ds(h, l_pool)]        # odd  outputs
            else:
                se = xo_ref[0, c, pl.ds(h, l_pool)]
                so = xe_ref[0, c, pl.ds(h + 1, l_pool)]
            acc_e = acc_e + wk * se[None, :]
            acc_o = acc_o + wk * so[None, :]

    pooled = jnp.maximum(jnp.maximum(acc_e, acc_o) + b_ref[...], 0.0)
    out_ref[0] = pooled.astype(out_ref.dtype)


def conv_relu_pool(x, w_taps, b2, K, padding):
    """x: (B, C_in, L) f32; w_taps: (C_in*K, C_out, 1); b2: (C_out, 1)."""
    B, c_in, L = x.shape
    c_out = w_taps.shape[1]
    xpad = jnp.pad(x, ((0, 0), (0, 0), (padding, padding)))
    l_pad = L + 2 * padding
    assert l_pad % 2 == 0
    l_out = l_pad - K + 1
    assert l_out % 2 == 0
    l_pool = l_out // 2
    le = l_pad // 2

    xr = xpad.reshape(B, c_in, le, 2)
    xe = xr[..., 0]                                   # (B, C_in, le) even samples
    xo = xr[..., 1]                                   # (B, C_in, le) odd samples

    kernel = functools.partial(_conv_relu_pool_kernel, K)
    return pl.pallas_call(
        kernel,
        out_shape=jax.ShapeDtypeStruct((B, c_out, l_pool), jnp.float32),
        grid=(B,),
        in_specs=[
            pl.BlockSpec((1, c_in, le), lambda bb: (bb, 0, 0)),
            pl.BlockSpec((1, c_in, le), lambda bb: (bb, 0, 0)),
            pl.BlockSpec((c_in * K, c_out, 1), lambda bb: (0, 0, 0)),
            pl.BlockSpec((c_out, 1), lambda bb: (0, 0)),
        ],
        out_specs=pl.BlockSpec((1, c_out, l_pool), lambda bb: (bb, 0, 0)),
        compiler_params=pltpu.CompilerParams(dimension_semantics=("parallel",)),
    )(xe, xo, w_taps, b2)


# ----------------------------------------------------------------------------
# Tiled matmul + bias (the FC hot path).  Weight-streaming bound (M=2), so the
# output block is resident across the k axis and accumulated in place.
# ----------------------------------------------------------------------------
def _linear_kernel(x_ref, w_ref, b_ref, o_ref):
    k = pl.program_id(1)

    @pl.when(k == 0)
    def _():
        o_ref[...] = jnp.zeros_like(o_ref)

    o_ref[...] += jnp.dot(x_ref[...].astype(w_ref.dtype), w_ref[...],
                          preferred_element_type=jnp.float32)

    @pl.when(k == pl.num_programs(1) - 1)
    def _():
        o_ref[...] += b_ref[...]


def _linear_softmax_kernel(n_valid, x_ref, w_ref, b_ref, o_ref):
    """Same matmul, but the epilogue fuses bias + row softmax (padded logit
    columns masked out).  Requires the full output row in one N tile."""
    k = pl.program_id(1)

    @pl.when(k == 0)
    def _():
        o_ref[...] = jnp.zeros_like(o_ref)

    o_ref[...] += jnp.dot(x_ref[...].astype(w_ref.dtype), w_ref[...],
                          preferred_element_type=jnp.float32)

    @pl.when(k == pl.num_programs(1) - 1)
    def _():
        logits = o_ref[...] + b_ref[...]
        col = lax.broadcasted_iota(jnp.int32, logits.shape, 1)
        logits = jnp.where(col < n_valid, logits, -jnp.inf)
        m = jnp.max(logits, axis=-1, keepdims=True)
        e = jnp.exp(logits - m)
        s = jnp.sum(e, axis=-1, keepdims=True)
        o_ref[...] = e / s


def _pick_tiles(K, N):
    n_pad = _round_up(N, 128)
    tn = min(n_pad, MAX_TN)
    # Give the megacore-parallel N axis at least two tiles when the layer is
    # big enough (keeps both TensorCores streaming weights on v7x).
    if n_pad // tn == 1 and n_pad >= 256 and (n_pad // 2) % 128 == 0:
        tn = n_pad // 2
    n_pad = _round_up(n_pad, tn)
    k_pad = _round_up(K, 128)
    tk = min(k_pad, MAX_TK)
    k_pad = _round_up(k_pad, tk)
    return k_pad, n_pad, tk, tn


def pack_linear_params(w, b, weight_dtype=WEIGHT_DTYPE):
    """One-time weight prep: w (N, K) PyTorch layout -> padded (K_pad, N_pad)
    in `weight_dtype`; bias padded to (1, N_pad) f32.  Done outside the
    forward so the big fc1 weight is never re-transposed/re-padded per call."""
    N, K = w.shape
    k_pad, n_pad, tk, tn = _pick_tiles(K, N)
    wp = jnp.pad(jnp.transpose(w),
                 ((0, k_pad - K), (0, n_pad - N))).astype(weight_dtype)
    bp = jnp.pad(b, (0, n_pad - N)).reshape(1, n_pad).astype(jnp.float32)
    return {"w": wp, "b": bp, "n": int(N), "k": int(K), "tk": tk, "tn": tn}


def linear(x, packed, *, fuse_softmax=False):
    """x: (M, K) f32, packed: output of pack_linear_params -> (M, N) f32."""
    M, K = x.shape
    wp, bp = packed["w"], packed["b"]
    k_pad, n_pad = wp.shape
    tk, tn = packed["tk"], packed["tn"]
    assert K == packed["k"]
    xp = jnp.pad(x, ((0, 0), (0, k_pad - K))) if k_pad != K else x

    if fuse_softmax:
        assert n_pad == tn, "fused softmax needs the full row in one N tile"
        kernel = functools.partial(_linear_softmax_kernel, packed["n"])
    else:
        kernel = _linear_kernel

    flops = 2 * M * K * packed["n"]
    bytes_accessed = (xp.size * xp.dtype.itemsize
                      + wp.size * wp.dtype.itemsize
                      + bp.size * bp.dtype.itemsize
                      + M * n_pad * 4)

    out = pl.pallas_call(
        kernel,
        out_shape=jax.ShapeDtypeStruct((M, n_pad), jnp.float32),
        grid=(n_pad // tn, k_pad // tk),
        in_specs=[
            pl.BlockSpec((M, tk), lambda j, k: (0, k)),
            pl.BlockSpec((tk, tn), lambda j, k: (k, j)),
            pl.BlockSpec((1, tn), lambda j, k: (0, j)),
        ],
        out_specs=pl.BlockSpec((M, tn), lambda j, k: (0, j)),
        compiler_params=pltpu.CompilerParams(
            dimension_semantics=("parallel", "arbitrary"),
            vmem_limit_bytes=VMEM_LIMIT_BYTES),
        cost_estimate=pl.CostEstimate(
            flops=flops,
            transcendentals=M * n_pad if fuse_softmax else 0,
            bytes_accessed=bytes_accessed),
    )(xp, wp, bp)
    return out[:, :packed["n"]]


# ----------------------------------------------------------------------------
# One-time parameter preparation + full forward.
# ----------------------------------------------------------------------------
def prepare_params(params, weight_dtype=WEIGHT_DTYPE):
    conv_w = params["conv_w"]
    c_out, c_in, K = conv_w.shape
    w_taps = jnp.transpose(conv_w, (1, 2, 0)).reshape(c_in * K, c_out)[..., None]
    return {
        "conv_w_taps": w_taps,
        "conv_b": params["conv_b"].reshape(c_out, 1),
        "conv_k": int(K),
        "fc1": pack_linear_params(params["fc1_w"], params["fc1_b"], weight_dtype),
        "fc2": pack_linear_params(params["fc2_w"], params["fc2_b"], weight_dtype),
        "fc3": pack_linear_params(params["fc3_w"], params["fc3_b"], weight_dtype),
    }


def nir_conv1_forward(x, prep, padding):
    h = conv_relu_pool(x, prep["conv_w_taps"], prep["conv_b"],
                       prep["conv_k"], padding)
    h = h.reshape(h.shape[0], -1)                      # (B, 8 * 1037) = (B, 8296)
    h = linear(h, prep["fc1"])
    h = linear(h, prep["fc2"])
    h = linear(h, prep["fc3"], fuse_softmax=True)      # softmax fused in epilogue
    return h


# ----------------------------------------------------------------------------
# Pure-JAX references.
# ----------------------------------------------------------------------------
def _reference_conv_pool(x, params, padding):
    w, b = params["conv_w"], params["conv_b"]
    B, c_in, L = x.shape
    c_out, _, K = w.shape
    xpad = jnp.pad(x, ((0, 0), (0, 0), (padding, padding)))
    l_out = L + 2 * padding - K + 1
    patches = jnp.stack([xpad[:, :, k:k + l_out] for k in range(K)], axis=2)
    conv = jnp.einsum("bckt,ock->bot", patches, w,
                      precision=lax.Precision.HIGHEST) + b[None, :, None]
    conv = jnp.maximum(conv, 0.0)
    pooled = conv.reshape(B, c_out, l_out // 2, 2).max(axis=-1)
    return pooled.reshape(B, -1)


def reference_forward_f32(x, params, padding):
    """Faithful f32 reference of the original PyTorch module."""
    h = _reference_conv_pool(x, params, padding)
    for i in (1, 2, 3):
        h = jnp.dot(h, params[f"fc{i}_w"].T,
                    precision=lax.Precision.HIGHEST) + params[f"fc{i}_b"]
    return jax.nn.softmax(h, axis=1)


def reference_forward_quantized(x, params, padding, weight_dtype=WEIGHT_DTYPE):
    """Mirrors the kernel's numerics: bf16-stored weights/activations into the
    MXU with f32 accumulation."""
    h = _reference_conv_pool(x, params, padding)
    for i in (1, 2, 3):
        wq = params[f"fc{i}_w"].astype(weight_dtype)
        h = jnp.dot(h.astype(weight_dtype), wq.T,
                    preferred_element_type=jnp.float32) + params[f"fc{i}_b"]
    return jax.nn.softmax(h, axis=1)


if __name__ == "__main__":
    # Configuration (flatten size must be 8296 to match the hard-coded fc).
    B, C_IN, C_OUT, KSIZE, STRIDE, PAD, L = 2, 1, 8, 5, 1, 2, 2074
    assert STRIDE == 1
    assert C_OUT * ((L + 2 * PAD - KSIZE + 1) // 2) == 8296

    key = jax.random.PRNGKey(0)
    ks = jax.random.split(key, 9)
    params = {
        "conv_w": jax.random.normal(ks[0], (C_OUT, C_IN, KSIZE), jnp.float32)
                  / np.sqrt(C_IN * KSIZE),
        "conv_b": 0.1 * jax.random.normal(ks[1], (C_OUT,), jnp.float32),
        "fc1_w": jax.random.normal(ks[2], (4000, 8296), jnp.float32) / np.sqrt(8296.0),
        "fc1_b": 0.1 * jax.random.normal(ks[3], (4000,), jnp.float32),
        "fc2_w": jax.random.normal(ks[4], (1000, 4000), jnp.float32) / np.sqrt(4000.0),
        "fc2_b": 0.1 * jax.random.normal(ks[5], (1000,), jnp.float32),
        "fc3_w": jax.random.normal(ks[6], (10, 1000), jnp.float32) / np.sqrt(1000.0),
        "fc3_b": 0.1 * jax.random.normal(ks[7], (10,), jnp.float32),
    }
    x = jax.random.normal(ks[8], (B, C_IN, L), jnp.float32)

    # One-time weight packing (not part of the per-forward path).
    prep = jax.block_until_ready(prepare_params(params))

    out = nir_conv1_forward(x, prep, PAD)
    out = jax.block_until_ready(out)

    # Sanity checks.
    assert out.shape == (B, 10), out.shape
    out_np = np.asarray(out)
    assert np.all(np.isfinite(out_np))
    assert np.allclose(out_np.sum(axis=1), 1.0, atol=1e-3)

    # Tight check: against a reference using the same bf16 weight numerics.
    ref_q = np.asarray(jax.block_until_ready(
        reference_forward_quantized(x, params, PAD)))
    assert np.allclose(out_np, ref_q, atol=5e-3), np.abs(out_np - ref_q).max()

    # Loose check: against the faithful f32 module semantics.
    ref_f32 = np.asarray(jax.block_until_ready(
        reference_forward_f32(x, params, PAD)))
    assert np.allclose(out_np, ref_f32, atol=5e-2), np.abs(out_np - ref_f32).max()

    print("KERNEL_OK")
</pallas_src>

<mosaic_0001>
module attributes {stable_mosaic.version = 11 : i64} {
  func.func @_conv_relu_pool_kernel(%arg0: i32, %arg1: memref<1x1x1039xf32, #tpu.memory_space<vmem>>, %arg2: memref<1x1x1039xf32, #tpu.memory_space<vmem>>, %arg3: memref<5x8x1xf32, #tpu.memory_space<vmem>>, %arg4: memref<8x1xf32, #tpu.memory_space<vmem>>, %arg5: memref<1x8x1037xf32, #tpu.memory_space<vmem>>) attributes {dimension_semantics = [#tpu.dimension_semantics<parallel>], iteration_bounds = array<i64: 2>, scalar_prefetch = 0 : i64, scratch_operands = 0 : i64, tpu.core_type = #tpu.core_type<tc>, window_params = [{transform_indices = @transform_0, window_bounds = array<i64: 1, 1, 1039>}, {transform_indices = @transform_1, window_bounds = array<i64: 1, 1, 1039>}, {pipeline_mode = #tpu.pipeline_mode<synchronous>, transform_indices = @transform_2, window_bounds = array<i64: 5, 8, 1>}, {pipeline_mode = #tpu.pipeline_mode<synchronous>, transform_indices = @transform_3, window_bounds = array<i64: 8, 1>}, {transform_indices = @transform_4, window_bounds = array<i64: 1, 8, 1037>}]} {
    %cst = arith.constant 0.000000e+00 : f32
    %0 = vector.broadcast %cst : f32 to vector<8x1037xf32>
    %cst_0 = arith.constant 0.000000e+00 : f32
    %1 = vector.broadcast %cst_0 : f32 to vector<8x1037xf32>
    %c0 = arith.constant 0 : index
    %c0_1 = arith.constant 0 : index
    %c0_2 = arith.constant 0 : index
    %2 = vector.load %arg3[%c0, %c0_1, %c0_2] : memref<5x8x1xf32, #tpu.memory_space<vmem>>, vector<1x8x1xf32>
    %3 = vector.shape_cast %2 : vector<1x8x1xf32> to vector<8x1xf32>
    %c0_3 = arith.constant 0 : index
    %c0_4 = arith.constant 0 : index
    %c0_5 = arith.constant 0 : index
    %4 = vector.load %arg1[%c0_3, %c0_4, %c0_5] : memref<1x1x1039xf32, #tpu.memory_space<vmem>>, vector<1x1x1037xf32>
    %5 = vector.shape_cast %4 : vector<1x1x1037xf32> to vector<1037xf32>
    %c0_6 = arith.constant 0 : index
    %c0_7 = arith.constant 0 : index
    %c0_8 = arith.constant 0 : index
    %6 = vector.load %arg2[%c0_6, %c0_7, %c0_8] : memref<1x1x1039xf32, #tpu.memory_space<vmem>>, vector<1x1x1037xf32>
    %7 = vector.shape_cast %6 : vector<1x1x1037xf32> to vector<1037xf32>
    %8 = vector.shape_cast %5 : vector<1037xf32> to vector<1x1037xf32>
    %9 = vector.broadcast %3 : vector<8x1xf32> to vector<8x1037xf32>
    %10 = vector.broadcast %8 : vector<1x1037xf32> to vector<8x1037xf32>
    %11 = arith.mulf %9, %10 : vector<8x1037xf32>
    %12 = arith.addf %0, %11 : vector<8x1037xf32>
    %13 = vector.shape_cast %7 : vector<1037xf32> to vector<1x1037xf32>
    %14 = vector.broadcast %3 : vector<8x1xf32> to vector<8x1037xf32>
    %15 = vector.broadcast %13 : vector<1x1037xf32> to vector<8x1037xf32>
    %16 = arith.mulf %14, %15 : vector<8x1037xf32>
    %17 = arith.addf %1, %16 : vector<8x1037xf32>
    %c1 = arith.constant 1 : index
    %c0_9 = arith.constant 0 : index
    %c0_10 = arith.constant 0 : index
    %18 = vector.load %arg3[%c1, %c0_9, %c0_10] : memref<5x8x1xf32, #tpu.memory_space<vmem>>, vector<1x8x1xf32>
    %19 = vector.shape_cast %18 : vector<1x8x1xf32> to vector<8x1xf32>
    %c0_11 = arith.constant 0 : index
    %c0_12 = arith.constant 0 : index
    %c0_13 = arith.constant 0 : index
    %20 = vector.load %arg2[%c0_11, %c0_12, %c0_13] : memref<1x1x1039xf32, #tpu.memory_space<vmem>>, vector<1x1x1037xf32>
    %21 = vector.shape_cast %20 : vector<1x1x1037xf32> to vector<1037xf32>
    %c0_14 = arith.constant 0 : index
    %c0_15 = arith.constant 0 : index
    %c1_16 = arith.constant 1 : index
    %22 = vector.load %arg1[%c0_14, %c0_15, %c1_16] : memref<1x1x1039xf32, #tpu.memory_space<vmem>>, vector<1x1x1037xf32>
    %23 = vector.shape_cast %22 : vector<1x1x1037xf32> to vector<1037xf32>
    %24 = vector.shape_cast %21 : vector<1037xf32> to vector<1x1037xf32>
    %25 = vector.broadcast %19 : vector<8x1xf32> to vector<8x1037xf32>
    %26 = vector.broadcast %24 : vector<1x1037xf32> to vector<8x1037xf32>
    %27 = arith.mulf %25, %26 : vector<8x1037xf32>
    %28 = arith.addf %12, %27 : vector<8x1037xf32>
    %29 = vector.shape_cast %23 : vector<1037xf32> to vector<1x1037xf32>
    %30 = vector.broadcast %19 : vector<8x1xf32> to vector<8x1037xf32>
    %31 = vector.broadcast %29 : vector<1x1037xf32> to vector<8x1037xf32>
    %32 = arith.mulf %30, %31 : vector<8x1037xf32>
    %33 = arith.addf %17, %32 : vector<8x1037xf32>
    %c2 = arith.constant 2 : index
    %c0_17 = arith.constant 0 : index
    %c0_18 = arith.constant 0 : index
    %34 = vector.load %arg3[%c2, %c0_17, %c0_18] : memref<5x8x1xf32, #tpu.memory_space<vmem>>, vector<1x8x1xf32>
    %35 = vector.shape_cast %34 : vector<1x8x1xf32> to vector<8x1xf32>
    %c0_19 = arith.constant 0 : index
    %c0_20 = arith.constant 0 : index
    %c1_21 = arith.constant 1 : index
    %36 = vector.load %arg1[%c0_19, %c0_20, %c1_21] : memref<1x1x1039xf32, #tpu.memory_space<vmem>>, vector<1x1x1037xf32>
    %37 = vector.shape_cast %36 : vector<1x1x1037xf32> to vector<1037xf32>
    %c0_22 = arith.constant 0 : index
    %c0_23 = arith.constant 0 : index
    %c1_24 = arith.constant 1 : index
    %38 = vector.load %arg2[%c0_22, %c0_23, %c1_24] : memref<1x1x1039xf32, #tpu.memory_space<vmem>>, vector<1x1x1037xf32>
    %39 = vector.shape_cast %38 : vector<1x1x1037xf32> to vector<1037xf32>
    %40 = vector.shape_cast %37 : vector<1037xf32> to vector<1x1037xf32>
    %41 = vector.broadcast %35 : vector<8x1xf32> to vector<8x1037xf32>
    %42 = vector.broadcast %40 : vector<1x1037xf32> to vector<8x1037xf32>
    %43 = arith.mulf %41, %42 : vector<8x1037xf32>
    %44 = arith.addf %28, %43 : vector<8x1037xf32>
    %45 = vector.shape_cast %39 : vector<1037xf32> to vector<1x1037xf32>
    %46 = vector.broadcast %35 : vector<8x1xf32> to vector<8x1037xf32>
    %47 = vector.broadcast %45 : vector<1x1037xf32> to vector<8x1037xf32>
    %48 = arith.mulf %46, %47 : vector<8x1037xf32>
    %49 = arith.addf %33, %48 : vector<8x1037xf32>
    %c3 = arith.constant 3 : index
    %c0_25 = arith.constant 0 : index
    %c0_26 = arith.constant 0 : index
    %50 = vector.load %arg3[%c3, %c0_25, %c0_26] : memref<5x8x1xf32, #tpu.memory_space<vmem>>, vector<1x8x1xf32>
    %51 = vector.shape_cast %50 : vector<1x8x1xf32> to vector<8x1xf32>
    %c0_27 = arith.constant 0 : index
    %c0_28 = arith.constant 0 : index
    %c1_29 = arith.constant 1 : index
    %52 = vector.load %arg2[%c0_27, %c0_28, %c1_29] : memref<1x1x1039xf32, #tpu.memory_space<vmem>>, vector<1x1x1037xf32>
    %53 = vector.shape_cast %52 : vector<1x1x1037xf32> to vector<1037xf32>
    %c0_30 = arith.constant 0 : index
    %c0_31 = arith.constant 0 : index
    %c2_32 = arith.constant 2 : index
    %54 = vector.load %arg1[%c0_30, %c0_31, %c2_32] : memref<1x1x1039xf32, #tpu.memory_space<vmem>>, vector<1x1x1037xf32>
    %55 = vector.shape_cast %54 : vector<1x1x1037xf32> to vector<1037xf32>
    %56 = vector.shape_cast %53 : vector<1037xf32> to vector<1x1037xf32>
    %57 = vector.broadcast %51 : vector<8x1xf32> to vector<8x1037xf32>
    %58 = vector.broadcast %56 : vector<1x1037xf32> to vector<8x1037xf32>
    %59 = arith.mulf %57, %58 : vector<8x1037xf32>
    %60 = arith.addf %44, %59 : vector<8x1037xf32>
    %61 = vector.shape_cast %55 : vector<1037xf32> to vector<1x1037xf32>
    %62 = vector.broadcast %51 : vector<8x1xf32> to vector<8x1037xf32>
    %63 = vector.broadcast %61 : vector<1x1037xf32> to vector<8x1037xf32>
    %64 = arith.mulf %62, %63 : vector<8x1037xf32>
    %65 = arith.addf %49, %64 : vector<8x1037xf32>
    %c4 = arith.constant 4 : index
    %c0_33 = arith.constant 0 : index
    %c0_34 = arith.constant 0 : index
    %66 = vector.load %arg3[%c4, %c0_33, %c0_34] : memref<5x8x1xf32, #tpu.memory_space<vmem>>, vector<1x8x1xf32>
    %67 = vector.shape_cast %66 : vector<1x8x1xf32> to vector<8x1xf32>
    %c0_35 = arith.constant 0 : index
    %c0_36 = arith.constant 0 : index
    %c2_37 = arith.constant 2 : index
    %68 = vector.load %arg1[%c0_35, %c0_36, %c2_37] : memref<1x1x1039xf32, #tpu.memory_space<vmem>>, vector<1x1x1037xf32>
    %69 = vector.shape_cast %68 : vector<1x1x1037xf32> to vector<1037xf32>
    %c0_38 = arith.constant 0 : index
    %c0_39 = arith.constant 0 : index
    %c2_40 = arith.constant 2 : index
    %70 = vector.load %arg2[%c0_38, %c0_39, %c2_40] : memref<1x1x1039xf32, #tpu.memory_space<vmem>>, vector<1x1x1037xf32>
    %71 = vector.shape_cast %70 : vector<1x1x1037xf32> to vector<1037xf32>
    %72 = vector.shape_cast %69 : vector<1037xf32> to vector<1x1037xf32>
    %73 = vector.broadcast %67 : vector<8x1xf32> to vector<8x1037xf32>
    %74 = vector.broadcast %72 : vector<1x1037xf32> to vector<8x1037xf32>
    %75 = arith.mulf %73, %74 : vector<8x1037xf32>
    %76 = arith.addf %60, %75 : vector<8x1037xf32>
    %77 = vector.shape_cast %71 : vector<1037xf32> to vector<1x1037xf32>
    %78 = vector.broadcast %67 : vector<8x1xf32> to vector<8x1037xf32>
    %79 = vector.broadcast %77 : vector<1x1037xf32> to vector<8x1037xf32>
    %80 = arith.mulf %78, %79 : vector<8x1037xf32>
    %81 = arith.addf %65, %80 : vector<8x1037xf32>
    %82 = arith.maximumf %76, %81 : vector<8x1037xf32>
    %c0_41 = arith.constant 0 : index
    %c0_42 = arith.constant 0 : index
    %83 = vector.load %arg4[%c0_41, %c0_42] : memref<8x1xf32, #tpu.memory_space<vmem>>, vector<8x1xf32>
    %84 = vector.broadcast %83 : vector<8x1xf32> to vector<8x1037xf32>
    %85 = arith.addf %82, %84 : vector<8x1037xf32>
    %cst_43 = arith.constant 0.000000e+00 : f32
    %86 = vector.broadcast %cst_43 : f32 to vector<8x1037xf32>
    %87 = arith.maximumf %85, %86 : vector<8x1037xf32>
    %c0_44 = arith.constant 0 : index
    %c0_45 = arith.constant 0 : index
    %c0_46 = arith.constant 0 : index
    %88 = vector.load %arg5[%c0_44, %c0_45, %c0_46] : memref<1x8x1037xf32, #tpu.memory_space<vmem>>, vector<1x8x1037xf32>
    %89 = vector.shape_cast %88 : vector<1x8x1037xf32> to vector<8x1037xf32>
    %90 = vector.shape_cast %87 : vector<8x1037xf32> to vector<1x8x1037xf32>
    tpu.vector_store %arg5[%c0_44, %c0_45, %c0_46], %90 {strides = array<i32>} : memref<1x8x1037xf32, #tpu.memory_space<vmem>>, vector<1x8x1037xf32>,
    return
  }
  func.func @transform_0(%arg0: i32) -> (i32, i32, i32) {
    %c0_i32 = arith.constant 0 : i32
    %c0_i32_0 = arith.constant 0 : i32
    %c0_i32_1 = arith.constant 0 : i32
    return %arg0, %c0_i32, %c0_i32_0 : i32, i32, i32
  }
  func.func @transform_1(%arg0: i32) -> (i32, i32, i32) {
    %c0_i32 = arith.constant 0 : i32
    %c0_i32_0 = arith.constant 0 : i32
    %c0_i32_1 = arith.constant 0 : i32
    return %arg0, %c0_i32, %c0_i32_0 : i32, i32, i32
  }
  func.func @transform_2(%arg0: i32) -> (i32, i32, i32) {
    %c0_i32 = arith.constant 0 : i32
    %c0_i32_0 = arith.constant 0 : i32
    %c0_i32_1 = arith.constant 0 : i32
    %c0_i32_2 = arith.constant 0 : i32
    return %c0_i32, %c0_i32_0, %c0_i32_1 : i32, i32, i32
  }
  func.func @transform_3(%arg0: i32) -> (i32, i32) {
    %c0_i32 = arith.constant 0 : i32
    %c0_i32_0 = arith.constant 0 : i32
    %c0_i32_1 = arith.constant 0 : i32
    return %c0_i32, %c0_i32_0 : i32, i32
  }
  func.func @transform_4(%arg0: i32) -> (i32, i32, i32) {
    %c0_i32 = arith.constant 0 : i32
    %c0_i32_0 = arith.constant 0 : i32
    %c0_i32_1 = arith.constant 0 : i32
    return %arg0, %c0_i32, %c0_i32_0 : i32, i32, i32
  }
}

</mosaic_0001>

<bundles_post_ra>
// kernel: tpu_custom_call.1
= control target key start
LH: loop header
LB: loop body
LE: loop exit
PB: predicated region body
PF: predicated region fallthrough
CT: control target
= control target key end

     0   :  { %9 = vsyncpa [#allocation3], 0  ;;  %s1682_s0 = inlined_call_operand.vmem [shape: f32[2,1,1039], index: 0, kind: input, shape index: {}]   ;;  %s1683_s1 = inlined_call_operand.vmem [shape: f32[2,1,1039], index: 1, kind: input, shape index: {}]   ;;  %s1684_s2 = inlined_call_operand.vmem [shape: f32[5,8,1], index: 2, kind: input, shape index: {}]   ;;  %s1685_s3 = inlined_call_operand.vmem [shape: f32[8,1], index: 3, kind: input, shape index: {}]   ;;  %s1686_s4 = inlined_call_operand.hbm [shape: f32[2,8,1037], index: 4, kind: output, shape index: {}]  }
   0x1   :  { %11 = vsyncpa [#allocation3 + $0x1], 0  ;;  %s1112_s15 = smov 0   ;;  %s1114_s16 = smov 0  }
   0x2   :  { %s1116_s17 = smov 0   ;;  %s1118_s18 = smov 0  }
   0x3 LB: > { %s1133_s19 = sadd.s32 4294967295, %s1081_s18   ;;  %s961_s20 = sadd.s32 4294967294, %s1081_s18   ;;  %s1081_s18 = sphi %s1118_s18, %s1692_s18   ;;  %s1077_s17 = sphi %s1116_s17, %s1691_s17   ;;  %s1073_s16 = sphi %s1114_s16, %s1690_s16   ;;  %s1069_s15 = sphi %s1112_s15, %s1689_s15  }
   0x4   : > { %s1137_s21 = sadd.s32 1, %s1081_s18   ;;  %s118_s22 = sadd.s32 1, %s1077_s17 }
   0x5   : > { %s115_s23 = ssub.s32 %s1081_s18, %s1137_s21  ;;  %p128_p0 = scmp.ne.s32.totalorder %s1077_s17, %s1073_s16 }
   0x6   : > { %p116_p1 = scmp.eq.s32.totalorder %s115_s23, 0  ;;  %p129_p2 = scmp.eq.s32.totalorder %s1133_s19, 1 }
   0x7   : > { %p134_p3 = scmp.ne.s32.totalorder %s1073_s16, %s1069_s15  ;;  %p135_p4 = scmp.eq.s32.totalorder %s961_s20, 1 }
   0x8   : > { %s1148_s24 = scalar_select %p116_p1, %s1077_s17, %s118_s22  }
   0x9   : > { %p1150_p5 = por %p129_p2, %p128_p0  ;;  %p1154_p6 = por %p135_p4, %p134_p3 }
   0xa   : > { %p964_p7 = scmp.ge.s32.totalorder %s1081_s18, 1  ;;  %p173_p8 = scmp.lt.s32.totalorder %s1081_s18, 3 }
   0xc   : > { %p174_p9 = pnand %p964_p7, %p173_p8 }
   0xd   : > { %p202_p10 = scmp.lt.s32.totalorder (!%p174_p9), %s1133_s19, 1  ;;  %s1084_s28 = smov (!%p174_p9), 127  }
   0xe   : > { %177 = sbr.rel (%p174_p9) target bundleno = 420 (0x1a4), region = 36  ;;  %s1085_s29 = smov (!%p174_p9), 126  }
   0xf   : > { %s199_s6 = sand.u32 (!%p174_p9), 1, %s1073_s16   ;;  %s976_s8 = smul.u32 (!%p174_p9), 1152, %s1133_s19 }
  0x10   : > { %s974_s7 = smul.u32 (!%p174_p9), 72, %s199_s6  ;;  %s876_s13 = scalar_lea.sflag (!%p174_p9), [#allocation3], %s199_s6 }
  0x12   : > { %s201_s9 = scalar_lea.vmem (!%p174_p9), [#allocation2], %s974_s7 }
  0x13   : > { %v210_v0 = vld [vmem:[%s1684_s2] sm:$0xff]  ;;  %v1083_v1 = vmov 0   ;;  %v968_v2 = vld [vmem:[%s1684_s2 + $0x10] sm:$0xff]  ;;  %v967_v3 = vld [vmem:[%s1684_s2 + $0x8] sm:$0xff]  ;;  %s203_s11 = scalar_select %p202_p10, %s1133_s19, 1  ;;  %v222_v6 = vlaneseq  ;;  %vm411_vm0 = vcmask 1039360  }
  0x14   : > { %1019 = vset.pattern.permute.xlu0 %v1083_v1  ;;  %1020 = vset.pattern.permute.xlu1 %v1083_v1  ;;  %v970_v4 = vld [vmem:[%s1684_s2 + $0x20] sm:$0xff]  ;;  %v969_v5 = vld [vmem:[%s1684_s2 + $0x18] sm:$0xff]  ;;  %vm674_vm1 = vcmask 1031168   ;;  %vm873_vm2 = vcmask 105472   ;;  %s890_s10 = sshll.u32 %s201_s9, 4  ;;  %s1640_s10 = int_to_ptr.vmem [resolvable:$true] %s890_s10 }
  0x15   : > { %217 = vperm.xlu0 %1019, %v210_v0   ;;  %442 = vperm.xlu1 %1020, %v968_v2   ;;  %s975_s12 = smul.u32 9, %s203_s11  ;;  %v223_v7 = vshrl.u32 %v222_v6, 7  ;;  %s1021_s14 = scalar_lea.vmem %s1640_s10, 1152 }
  0x16   : > { %p1022_p11 = scmp.ne.s32.totalorder %s1640_s10, %s1021_s14 }
  0x17   : > { %s1180_s20 = scalar_lea.vmem %s1682_s0, %s975_s12  ;;  %v232_v8 = vsub.s32 2, %v223_v7  ;;  %v224_v9 = vsub.s32 0, %v223_v7  ;;  %v236_v14 = vsub.s32 3, %v223_v7  ;;  %v228_v15 = vsub.s32 1, %v223_v7  ;;  %s1198_s27 = scalar_lea.vmem %s1683_s1, %s975_s12 }
  0x18   : > { %v211_v11 = vld [vmem:[%s1180_s20] sm:$0xff]  ;;  %v244_v21 = vsub.s32 5, %v223_v7  ;;  %v240_v22 = vsub.s32 4, %v223_v7  ;;  %v252_v26 = vsub.s32 7, %v223_v7  ;;  %v248_v29 = vsub.s32 6, %v223_v7  ;;  %s1638_s12 = scalar_lea.hbm %s1686_s4, %s976_s8  ;;  %p1023_p12 = pnand %p1022_p11, %p1150_p5 }
  0x19   : > { %354 = vperm.xlu0 %1019, %v967_v3   ;;  %705 = vperm.xlu1 %1020, %v970_v4   ;;  %v1185_v12 = vrot.slane %v211_v11, %v232_v8  ;;  %v1187_v13 = vrot.slane %v211_v11, %v224_v9  ;;  %v1202_v19 = vrot.slane %v211_v11, %v236_v14  ;;  %v213_v25 = vld [vmem:[%s1198_s27] sm:$0xff]  ;;  %v1252_v46 = vld [vmem:[%s1198_s27 + $0x8] ss:$0 sm:$0xff] }
  0x1a   : > { %v1204_v20 = vrot.slane %v211_v11, %v228_v15  ;;  %v1213_v27 = vrot.slane %v211_v11, %v244_v21  ;;  %v1215_v28 = vrot.slane %v211_v11, %v240_v22  ;;  %v1217_v30 = vrot.slane %v213_v25, %v232_v8  ;;  %v1263_v50 = vld [vmem:[%s1180_s20 + $0x8] ss:$0 sm:$0xff]  ;;  %p1024_p13 = pneg %p1023_p12  ;;  %s1086_s20 = smov [#allocation2]  }
  0x1b   : > { %v1223_v33 = vrot.slane %v213_v25, %v228_v15  ;;  %v1225_v34 = vrot.slane %v213_v25, %v224_v9  ;;  %v1227_v35 = vrot.slane %v211_v11, %v252_v26  ;;  %v1229_v36 = vrot.slane %v213_v25, %v236_v14  ;;  %s1025_s22 = sshll.u32 %s1086_s20, 4  ;;  %s1026_s22 = int_to_ptr.vmem [resolvable:$false] %s1025_s22 }
  0x1c   : > { %v1231_v37 = vrot.slane %v213_v25, %v244_v21  ;;  %v1233_v38 = vrot.slane %v213_v25, %v240_v22  ;;  %v1239_v40 = vrot.slane %v211_v11, %v248_v29  ;;  %v1241_v41 = vrot.slane %v213_v25, %v252_v26  ;;  %s1027_s23 = scalar_lea.vmem %s1026_s22, 2304  ;;  %p1028_p0 = scmp.lt.s32.totalorder %s1640_s10, %s1026_s22 }
  0x1d   : > { %573 = vperm.xlu0 %1019, %v969_v5   ;;  %v1243_v42 = vrot.slane %v213_v25, %v248_v29  ;;  %p1029_p1 = scmp.lt.s32.totalorder %s1027_s23, %s1021_s14 }
  0x1f   : > { %p1030_p2 = por %p1029_p1, %p1028_p0 }
  0x21   : > { %p1031_p3 = pnand %p1030_p2, %p1024_p13 }
  0x90   : > { %v1182_v10 = vpop.permute.xlu0 %217  ;;  %v1237_v39 = vpop.permute.xlu1 %442 }
  0x91   : > { %v445_v43 = vmul.f32 %v1237_v39, %v1187_v13  ;;  %v447_v44 = vmul.f32 %v1237_v39, %v1185_v12  ;;  %v446_v45 = vmul.f32 %v1237_v39, %v1204_v20  ;;  %v1256_v47 = vmul.f32 %v1217_v30, %v1182_v10 }
  0x92   : > { %v1267_v51 = vmul.f32 %v1225_v34, %v1182_v10  ;;  %v1271_v52 = vmul.f32 %v1223_v33, %v1182_v10  ;;  %v1277_v54 = vmul.f32 %v1229_v36, %v1182_v10  ;;  %v1281_v55 = vmul.f32 %v1233_v38, %v1182_v10 }
  0x93   : > { %v1285_v56 = vmul.f32 %v1231_v37, %v1182_v10  ;;  %v1291_v57 = vmul.f32 %v1243_v42, %v1182_v10  ;;  %v1295_v58 = vmul.f32 %v1241_v41, %v1182_v10  ;;  %v1299_v59 = vmul.f32 %v1252_v46, %v1182_v10 }
  0x94   : > { %v1189_v16 = vpop.permute.xlu0 %354  ;;  %v268_v60 = vmul.f32 %v1204_v20, %v1182_v10  ;;  %v267_v63 = vmul.f32 %v1187_v13, %v1182_v10  ;;  %v269_v0 = vmul.f32 %v1185_v12, %v1182_v10  ;;  %v270_v1 = vmul.f32 %v1202_v19, %v1182_v10 }
  0x95   : > { %v377_v17 = vmul.f32 %v1189_v16, %v1185_v12  ;;  %v375_v18 = vmul.f32 %v1189_v16, %v1187_v13  ;;  %v378_v23 = vmul.f32 %v1189_v16, %v1202_v19  ;;  %v376_v24 = vmul.f32 %v1189_v16, %v1204_v20 }
  0x96   : > { %v380_v31 = vmul.f32 %v1189_v16, %v1213_v27  ;;  %v379_v32 = vmul.f32 %v1189_v16, %v1215_v28  ;;  %v382_v48 = vmul.f32 %v1189_v16, %v1227_v35  ;;  %v381_v49 = vmul.f32 %v1189_v16, %v1239_v40 }
  0x97   : > { %397 = vrot.lane.b32.xlu0 %v377_v17, %s1084_s28  ;;  %393 = vrot.lane.b32.xlu1 %v375_v18, %s1084_s28  ;;  %v383_v53 = vmul.f32 %v1263_v50, %v1189_v16  ;;  %v357_v61 = vmul.f32 %v1189_v16, %v1225_v34  ;;  %v358_v62 = vmul.f32 %v1189_v16, %v1223_v33 }
  0x98   : > { %v359_v2 = vmul.f32 %v1189_v16, %v1217_v30  ;;  %v360_v3 = vmul.f32 %v1189_v16, %v1229_v36  ;;  %v271_v6 = vmul.f32 %v1215_v28, %v1182_v10  ;;  %v272_v7 = vmul.f32 %v1213_v27, %v1182_v10 }
  0x99   : > { %v1317_v4 = vadd.f32 %v358_v62, %v268_v60  ;;  %v1319_v5 = vadd.f32 %v357_v61, %v267_v63  ;;  %v361_v11 = vmul.f32 %v1189_v16, %v1233_v38  ;;  %v362_v14 = vmul.f32 %v1189_v16, %v1231_v37 }
  0x9a   : > { %v1327_v8 = vadd.f32 %v359_v2, %v269_v0  ;;  %v1329_v9 = vadd.f32 %v360_v3, %v270_v1  ;;  %v275_v15 = vmul.f32 %v1263_v50, %v1182_v10  ;;  %v365_v17 = vmul.f32 %v1252_v46, %v1189_v16  ;;  %v574_v1 = vpop.permute.xlu0 %573 }
  0x9b   : > { %399 = vrot.lane.b32.xlu0 %v378_v23, %s1084_s28  ;;  %395 = vrot.lane.b32.xlu1 %v376_v24, %s1084_s28  ;;  %v273_v18 = vmul.f32 %v1239_v40, %v1182_v10  ;;  %v1341_v21 = vadd.f32 %v361_v11, %v271_v6  ;;  %v274_v22 = vmul.f32 %v1227_v35, %v1182_v10 }
  0x9c   : > { %v363_v23 = vmul.f32 %v1189_v16, %v1243_v42  ;;  %v364_v24 = vmul.f32 %v1189_v16, %v1241_v41  ;;  %v1349_v25 = vadd.f32 %v362_v14, %v272_v7  ;;  %v1351_v26 = vadd.f32 %v365_v17, %v275_v15 }
  0x9d   : > { %v449_v10 = vmul.f32 %v1237_v39, %v1215_v28  ;;  %v451_v16 = vmul.f32 %v1237_v39, %v1239_v40  ;;  %v509_v60 = vmul.f32 %v1237_v39, %v1217_v30  ;;  %v512_v61 = vmul.f32 %v1237_v39, %v1231_v37 }
  0x9e   : > { %v1355_v29 = vadd.f32 %v363_v23, %v273_v18  ;;  %v511_v62 = vmul.f32 %v1237_v39, %v1233_v38  ;;  %v514_v63 = vmul.f32 %v1237_v39, %v1241_v41  ;;  %v513_v0 = vmul.f32 %v1237_v39, %v1243_v42 }
  0x9f   : > { %403 = vrot.lane.b32.xlu0 %v380_v31, %s1084_s28  ;;  %401 = vrot.lane.b32.xlu1 %v379_v32, %s1084_s28  ;;  %v1357_v31 = vadd.f32 %v364_v24, %v274_v22  ;;  %v448_v32 = vmul.f32 %v1237_v39, %v1202_v19  ;;  %v576_v2 = vmul.f32 %v574_v1, %v1225_v34 }
  0xa0   : > { %v515_v3 = vmul.f32 %v1252_v46, %v1237_v39  ;;  %v578_v6 = vmul.f32 %v574_v1, %v1217_v30  ;;  %v577_v7 = vmul.f32 %v574_v1, %v1223_v33  ;;  %v580_v11 = vmul.f32 %v574_v1, %v1233_v38 }
  0xa1   : > { %v579_v14 = vmul.f32 %v574_v1, %v1229_v36  ;;  %v581_v15 = vmul.f32 %v574_v1, %v1231_v37  ;;  %v584_v17 = vmul.f32 %v1252_v46, %v574_v1  ;;  %v583_v18 = vmul.f32 %v574_v1, %v1241_v41 }
  0xa2   : > { %v639_v22 = vmul.f32 %v574_v1, %v1204_v20  ;;  %v638_v23 = vmul.f32 %v574_v1, %v1187_v13  ;;  %v641_v24 = vmul.f32 %v574_v1, %v1202_v19 }
  0xa3   : > { %407 = vrot.lane.b32.xlu0 %v382_v48, %s1084_s28  ;;  %405 = vrot.lane.b32.xlu1 %v381_v49, %s1084_s28  ;;  %v508_v48 = vmul.f32 %v1237_v39, %v1223_v33  ;;  %v507_v49 = vmul.f32 %v1237_v39, %v1225_v34 }
  0xa7   : > { %463 = vrot.lane.b32.xlu0 %v445_v43, %s1084_s28  ;;  %409 = vrot.lane.b32.xlu1 %v383_v53, %s1084_s28  ;;  %v450_v43 = vmul.f32 %v1237_v39, %v1213_v27  ;;  %v510_v53 = vmul.f32 %v1237_v39, %v1229_v36 }
  0xab   : > { %467 = vrot.lane.b32.xlu0 %v447_v44, %s1084_s28  ;;  %465 = vrot.lane.b32.xlu1 %v446_v45, %s1084_s28  ;;  %v453_v44 = vmul.f32 %v1263_v50, %v1237_v39  ;;  %v452_v45 = vmul.f32 %v1237_v39, %v1227_v35  ;;  %v582_v39 = vmul.f32 %v574_v1, %v1243_v42 }
  0xaf   : > { %471 = vrot.lane.b32.xlu0 %v449_v10, %s1084_s28  ;;  %469 = vrot.lane.b32.xlu1 %v448_v32, %s1084_s28  ;;  %v640_v10 = vmul.f32 %v574_v1, %v1185_v12  ;;  %v643_v32 = vmul.f32 %v574_v1, %v1213_v27 }
  0xb3   : > { %475 = vrot.lane.b32.xlu0 %v451_v16, %s1084_s28  ;;  %473 = vrot.lane.b32.xlu1 %v450_v43, %s1084_s28  ;;  %v642_v16 = vmul.f32 %v574_v1, %v1215_v28  ;;  %v645_v43 = vmul.f32 %v574_v1, %v1227_v35 }
  0xb7   : > { %479 = vrot.lane.b32.xlu0 %v453_v44, %s1084_s28  ;;  %477 = vrot.lane.b32.xlu1 %v452_v45, %s1084_s28  ;;  %v644_v44 = vmul.f32 %v574_v1, %v1239_v40  ;;  %v706_v45 = vpop.permute.xlu1 %705 }
  0xbb   : > { %527 = vrot.lane.b32.xlu0 %v508_v48, %s1084_s28  ;;  %525 = vrot.lane.b32.xlu1 %v507_v49, %s1084_s28  ;;  %v708_v48 = vmul.f32 %v706_v45, %v1187_v13  ;;  %v646_v49 = vmul.f32 %v1263_v50, %v574_v1  ;;  %v714_v13 = vmul.f32 %v706_v45, %v1239_v40 }
  0xbc   : > { %v772_v40 = vmul.f32 %v706_v45, %v1217_v30  ;;  %v776_v30 = vmul.f32 %v706_v45, %v1243_v42 }
  0xbf   : > { %531 = vrot.lane.b32.xlu0 %v510_v53, %s1084_s28  ;;  %529 = vrot.lane.b32.xlu1 %v509_v60, %s1084_s28  ;;  %v710_v53 = vmul.f32 %v706_v45, %v1185_v12  ;;  %v709_v60 = vmul.f32 %v706_v45, %v1204_v20  ;;  %v716_v12 = vmul.f32 %v1263_v50, %v706_v45 }
  0xc0   : > { %v715_v20 = vmul.f32 %v706_v45, %v1227_v35 }
  0xc3   : > { %535 = vrot.lane.b32.xlu0 %v512_v61, %s1084_s28  ;;  %533 = vrot.lane.b32.xlu1 %v511_v62, %s1084_s28  ;;  %v712_v61 = vmul.f32 %v706_v45, %v1215_v28  ;;  %v711_v62 = vmul.f32 %v706_v45, %v1202_v19  ;;  %v771_v19 = vmul.f32 %v706_v45, %v1223_v33 }
  0xc4   : > { %v770_v28 = vmul.f32 %v706_v45, %v1225_v34  ;;  %v774_v33 = vmul.f32 %v706_v45, %v1233_v38 }
  0xc7   : > { %539 = vrot.lane.b32.xlu0 %v514_v63, %s1084_s28  ;;  %537 = vrot.lane.b32.xlu1 %v513_v0, %s1084_s28  ;;  %v713_v63 = vmul.f32 %v706_v45, %v1213_v27  ;;  %v773_v27 = vmul.f32 %v706_v45, %v1229_v36  ;;  %v775_v0 = vmul.f32 %v706_v45, %v1231_v37 }
  0xc8   : > { %v777_v36 = vmul.f32 %v706_v45, %v1241_v41  ;;  %v841_v41 = vld [vmem:[%s1685_s3] sm:$0xff] }
  0xcb   : > { %594 = vrot.lane.b32.xlu0 %v576_v2, %s1084_s28  ;;  %541 = vrot.lane.b32.xlu1 %v515_v3, %s1084_s28 }
  0xcf   : > { %598 = vrot.lane.b32.xlu0 %v578_v6, %s1084_s28  ;;  %596 = vrot.lane.b32.xlu1 %v577_v7, %s1084_s28 }
  0xd3   : > { %602 = vrot.lane.b32.xlu0 %v580_v11, %s1084_s28  ;;  %600 = vrot.lane.b32.xlu1 %v579_v14, %s1084_s28  ;;  %v778_v14 = vmul.f32 %v1252_v46, %v706_v45 }
  0xd7   : > { %606 = vrot.lane.b32.xlu0 %v582_v39, %s1084_s28  ;;  %604 = vrot.lane.b32.xlu1 %v581_v15, %s1084_s28 }
  0xdb   : > { %610 = vrot.lane.b32.xlu0 %v584_v17, %s1084_s28  ;;  %608 = vrot.lane.b32.xlu1 %v583_v18, %s1084_s28 }
  0xdf   : > { %658 = vrot.lane.b32.xlu0 %v639_v22, %s1085_s29  ;;  %656 = vrot.lane.b32.xlu1 %v638_v23, %s1085_s29 }
  0xe3   : > { %662 = vrot.lane.b32.xlu0 %v641_v24, %s1085_s29  ;;  %660 = vrot.lane.b32.xlu1 %v640_v10, %s1085_s29 }
  0xe7   : > { %666 = vrot.lane.b32.xlu0 %v643_v32, %s1085_s29  ;;  %664 = vrot.lane.b32.xlu1 %v642_v16, %s1085_s29 }
  0xeb   : > { %670 = vrot.lane.b32.xlu0 %v645_v43, %s1085_s29  ;;  %668 = vrot.lane.b32.xlu1 %v644_v44, %s1085_s29 }
  0xef   : > { %726 = vrot.lane.b32.xlu0 %v708_v48, %s1085_s29  ;;  %672 = vrot.lane.b32.xlu1 %v646_v49, %s1085_s29 }
  0xf3   : > { %730 = vrot.lane.b32.xlu0 %v710_v53, %s1085_s29  ;;  %728 = vrot.lane.b32.xlu1 %v709_v60, %s1085_s29 }
  0xf7   : > { %734 = vrot.lane.b32.xlu0 %v712_v61, %s1085_s29  ;;  %732 = vrot.lane.b32.xlu1 %v711_v62, %s1085_s29 }
  0xfb   : > { %738 = vrot.lane.b32.xlu0 %v714_v13, %s1085_s29  ;;  %736 = vrot.lane.b32.xlu1 %v713_v63, %s1085_s29 }
  0xff   : > { %742 = vrot.lane.b32.xlu0 %v716_v12, %s1085_s29  ;;  %740 = vrot.lane.b32.xlu1 %v715_v20, %s1085_s29 }
 0x103   : > { %790 = vrot.lane.b32.xlu0 %v771_v19, %s1085_s29  ;;  %788 = vrot.lane.b32.xlu1 %v770_v28, %s1085_s29 }
 0x107   : > { %794 = vrot.lane.b32.xlu0 %v773_v27, %s1085_s29  ;;  %792 = vrot.lane.b32.xlu1 %v772_v40, %s1085_s29 }
 0x109   : > { %v398_v35 = vpop.permute.xlu0 %397  ;;  %v394_v50 = vpop.permute.xlu1 %393 }
 0x10b   : > { %798 = vrot.lane.b32.xlu0 %v775_v0, %s1085_s29  ;;  %796 = vrot.lane.b32.xlu1 %v774_v33, %s1085_s29 }
 0x10d   : > { %v400_v34 = vpop.permute.xlu0 %399  ;;  %v396_v1 = vpop.permute.xlu1 %395 }
 0x10e   : > { %v414_v2 = vsel %vm411_vm0, %v398_v35, %v400_v34  ;;  %v412_v3 = vsel %vm411_vm0, %v394_v50, %v396_v1  ;;  %v413_v6 = vsel %vm411_vm0, %v396_v1, %v398_v35 }
 0x10f   : > { %v431_v37 = vadd.f32 %v414_v2, %v1256_v47  ;;  %v429_v38 = vadd.f32 %v412_v3, %v1267_v51  ;;  %v430_v7 = vadd.f32 %v413_v6, %v1271_v52  ;;  %802 = vrot.lane.b32.xlu0 %v777_v36, %s1085_s29  ;;  %800 = vrot.lane.b32.xlu1 %v776_v30, %s1085_s29 }
 0x111   : > { %v404_v42 = vpop.permute.xlu0 %403  ;;  %v402_v11 = vpop.permute.xlu1 %401 }
 0x112   : > { %v415_v39 = vsel %vm411_vm0, %v400_v34, %v402_v11  ;;  %v416_v47 = vsel %vm411_vm0, %v402_v11, %v404_v42 }
 0x113   : > { %v432_v51 = vadd.f32 %v415_v39, %v1277_v54  ;;  %v433_v52 = vadd.f32 %v416_v47, %v1281_v55  ;;  %844 = vperm.xlu0 %1019, %v841_v41   ;;  %804 = vrot.lane.b32.xlu1 %v778_v14, %s1085_s29 }
 0x115   : > { %v408_v15 = vpop.permute.xlu0 %407  ;;  %v406_v17 = vpop.permute.xlu1 %405 }
 0x116   : > { %v417_v18 = vsel %vm411_vm0, %v404_v42, %v406_v17  ;;  %v418_v22 = vsel %vm411_vm0, %v406_v17, %v408_v15 }
 0x117   : > { %v434_v23 = vadd.f32 %v417_v18, %v1285_v56  ;;  %v435_v46 = vadd.f32 %v418_v22, %v1291_v57 }
 0x119   : > { %v464_v24 = vpop.permute.xlu0 %463  ;;  %v410_v10 = vpop.permute.xlu1 %409 }
 0x11a   : > { %v419_v32 = vsel %vm411_vm0, %v408_v15, %v410_v10  ;;  %v437_v54 = vadd.f32 %v410_v10, %v1299_v59 }
 0x11b   : > { %v436_v55 = vadd.f32 %v419_v32, %v1295_v58 }
 0x11d   : > { %v468_v16 = vpop.permute.xlu0 %467  ;;  %v466_v43 = vpop.permute.xlu1 %465 }
 0x11e   : > { %v481_v44 = vsel %vm411_vm0, %v464_v24, %v466_v43  ;;  %v482_v45 = vsel %vm411_vm0, %v466_v43, %v468_v16 }
 0x11f   : > { %v498_v48 = vadd.f32 %v481_v44, %v1319_v5  ;;  %v499_v56 = vadd.f32 %v482_v45, %v1317_v4 }
 0x121   : > { %v472_v49 = vpop.permute.xlu0 %471  ;;  %v470_v57 = vpop.permute.xlu1 %469 }
 0x122   : > { %v483_v53 = vsel %vm411_vm0, %v468_v16, %v470_v57  ;;  %v484_v60 = vsel %vm411_vm0, %v470_v57, %v472_v49 }
 0x123   : > { %v1503_v59 = vadd.f32 %v483_v53, %v1327_v8  ;;  %v1506_v58 = vadd.f32 %v484_v60, %v1329_v9 }
 0x125   : > { %v476_v61 = vpop.permute.xlu0 %475  ;;  %v474_v62 = vpop.permute.xlu1 %473 }
 0x126   : > { %v485_v13 = vsel %vm411_vm0, %v472_v49, %v474_v62  ;;  %v486_v5 = vsel %vm411_vm0, %v474_v62, %v476_v61 }
 0x127   : > { %v1511_v4 = vadd.f32 %v485_v13, %v1341_v21  ;;  %v1514_v63 = vadd.f32 %v486_v5, %v1349_v25 }
 0x129   : > { %v480_v12 = vpop.permute.xlu0 %479  ;;  %v478_v20 = vpop.permute.xlu1 %477 }
 0x12a   : > { %v1517_v8 = vadd.f32 %v480_v12, %v1351_v26  ;;  %v487_v9 = vsel %vm411_vm0, %v476_v61, %v478_v20  ;;  %v488_v19 = vsel %vm411_vm0, %v478_v20, %v480_v12 }
 0x12b   : > { %v1522_v28 = vadd.f32 %v487_v9, %v1355_v29  ;;  %v1525_v27 = vadd.f32 %v488_v19, %v1357_v31 }
 0x12d   : > { %v528_v21 = vpop.permute.xlu0 %527  ;;  %v526_v40 = vpop.permute.xlu1 %525 }
 0x12e   : > { %v543_v25 = vsel %vm411_vm0, %v526_v40, %v528_v21 }
 0x12f   : > { %v560_v35 = vadd.f32 %v543_v25, %v429_v38 }
 0x131   : > { %v532_v50 = vpop.permute.xlu0 %531  ;;  %v530_v0 = vpop.permute.xlu1 %529 }
 0x132   : > { %v544_v26 = vsel %vm411_vm0, %v528_v21, %v530_v0  ;;  %v545_v33 = vsel %vm411_vm0, %v530_v0, %v532_v50 }
 0x133   : > { %v1530_v34 = vadd.f32 %v544_v26, %v430_v7  ;;  %v1532_v1 = vadd.f32 %v545_v33, %v431_v37 }
 0x135   : > { %v536_v29 = vpop.permute.xlu0 %535  ;;  %v534_v36 = vpop.permute.xlu1 %533 }
 0x136   : > { %v546_v31 = vsel %vm411_vm0, %v532_v50, %v534_v36  ;;  %v547_v30 = vsel %vm411_vm0, %v534_v36, %v536_v29 }
 0x137   : > { %v1536_v2 = vadd.f32 %v546_v31, %v432_v51  ;;  %v1538_v3 = vadd.f32 %v547_v30, %v433_v52 }
 0x139   : > { %v540_v6 = vpop.permute.xlu0 %539  ;;  %v538_v38 = vpop.permute.xlu1 %537 }
 0x13a   : > { %v548_v41 = vsel %vm411_vm0, %v536_v29, %v538_v38  ;;  %v549_v42 = vsel %vm411_vm0, %v538_v38, %v540_v6 }
 0x13b   : > { %v1542_v7 = vadd.f32 %v548_v41, %v434_v23  ;;  %v1544_v37 = vadd.f32 %v549_v42, %v435_v46 }
 0x13d   : > { %v595_v11 = vpop.permute.xlu0 %594  ;;  %v542_v14 = vpop.permute.xlu1 %541 }
 0x13e   : > { %v550_v39 = vsel %vm411_vm0, %v540_v6, %v542_v14  ;;  %v1547_v47 = vadd.f32 %v542_v14, %v437_v54 }
 0x13f   : > { %v1549_v51 = vadd.f32 %v550_v39, %v436_v55 }
 0x141   : > { %v599_v52 = vpop.permute.xlu0 %598  ;;  %v597_v15 = vpop.permute.xlu1 %596 }
 0x142   : > { %v612_v17 = vsel %vm411_vm0, %v595_v11, %v597_v15  ;;  %v613_v18 = vsel %vm411_vm0, %v597_v15, %v599_v52 }
 0x143   : > { %v629_v22 = vadd.f32 %v612_v17, %v498_v48  ;;  %v630_v24 = vadd.f32 %v613_v18, %v499_v56 }
 0x145   : > { %v603_v23 = vpop.permute.xlu0 %602  ;;  %v601_v10 = vpop.permute.xlu1 %600 }
 0x146   : > { %v614_v40 = vsel %vm411_vm0, %v599_v52, %v601_v10  ;;  %v615_v50 = vsel %vm411_vm0, %v601_v10, %v603_v23 }
 0x147   : > { %v631_v30 = vadd.f32 %v614_v40, %v1503_v59  ;;  %v632_v41 = vadd.f32 %v615_v50, %v1506_v58 }
 0x149   : > { %v607_v46 = vpop.permute.xlu0 %606  ;;  %v605_v32 = vpop.permute.xlu1 %604 }
 0x14a   : > { %v616_v42 = vsel %vm411_vm0, %v603_v23, %v605_v32  ;;  %v617_v14 = vsel %vm411_vm0, %v605_v32, %v607_v46 }
 0x14d   : > { %v1553_v16 = vpop.permute.xlu0 %610  ;;  %v1555_v43 = vpop.permute.xlu1 %608 }
 0x151   : > { %v659_v54 = vpop.permute.xlu0 %658  ;;  %v657_v44 = vpop.permute.xlu1 %656 }
 0x152   : > { %v675_v21 = vsel %vm674_vm1, %v657_v44, %v659_v54 }
 0x153   : > { %v692_v0 = vadd.f32 %v675_v21, %v560_v35 }
 0x155   : > { %v663_v55 = vpop.permute.xlu0 %662  ;;  %v661_v45 = vpop.permute.xlu1 %660 }
 0x156   : > { %v676_v29 = vsel %vm674_vm1, %v659_v54, %v661_v45  ;;  %v677_v36 = vsel %vm674_vm1, %v661_v45, %v663_v55 }
 0x157   : > { %v693_v39 = vadd.f32 %v676_v29, %v1530_v34  ;;  %v694_v52 = vadd.f32 %v677_v36, %v1532_v1  ;;  %v633_v34 = vadd.f32 %v616_v42, %v1511_v4  ;;  %v618_v1 = vsel %vm411_vm0, %v607_v46, %v1555_v43 }
 0x159   : > { %v667_v49 = vpop.permute.xlu0 %666  ;;  %v665_v57 = vpop.permute.xlu1 %664 }
 0x15a   : > { %v678_v18 = vsel %vm674_vm1, %v663_v55, %v665_v57  ;;  %v679_v58 = vsel %vm674_vm1, %v665_v57, %v667_v49 }
 0x15b   : > { %v695_v55 = vadd.f32 %v678_v18, %v1536_v2  ;;  %v696_v57 = vadd.f32 %v679_v58, %v1538_v3  ;;  %v634_v2 = vadd.f32 %v617_v14, %v1514_v63  ;;  %v635_v3 = vadd.f32 %v618_v1, %v1522_v28 }
 0x15d   : > { %v1557_v53 = vpop.permute.xlu0 %670  ;;  %v669_v60 = vpop.permute.xlu1 %668 }
 0x15e   : > { %v680_v40 = vsel %vm674_vm1, %v667_v49, %v669_v60  ;;  %v681_v4 = vsel %vm674_vm1, %v669_v60, %v1557_v53 }
 0x15f   : > { %v698_v60 = vadd.f32 %v681_v4, %v1544_v37 }
 0x161   : > { %v727_v61 = vpop.permute.xlu0 %726  ;;  %v1559_v48 = vpop.permute.xlu1 %672 }
 0x162   : > { %v682_v63 = vsel %vm674_vm1, %v1557_v53, %v1559_v48 }
 0x163   : > { %v699_v14 = vadd.f32 %v682_v63, %v1549_v51 }
 0x165   : > { %v731_v56 = vpop.permute.xlu0 %730  ;;  %v729_v62 = vpop.permute.xlu1 %728 }
 0x166   : > { %v744_v25 = vsel %vm674_vm1, %v727_v61, %v729_v62  ;;  %v745_v35 = vsel %vm674_vm1, %v729_v62, %v731_v56 }
 0x167   : > { %v1573_v6 = vadd.f32 %v744_v25, %v629_v22  ;;  %v762_v10 = vadd.f32 %v745_v35, %v630_v24  ;;  %v637_v35 = vadd.f32 %v1553_v16, %v1517_v8 }
 0x169   : > { %v735_v13 = vpop.permute.xlu0 %734  ;;  %v733_v5 = vpop.permute.xlu1 %732 }
 0x16a   : > { %v746_v11 = vsel %vm674_vm1, %v731_v56, %v733_v5  ;;  %v747_v45 = vsel %vm674_vm1, %v733_v5, %v735_v13 }
 0x16b   : > { %v763_v54 = vadd.f32 %v746_v11, %v631_v30  ;;  %v764_v5 = vadd.f32 %v747_v45, %v632_v41  ;;  %v619_v41 = vsel %vm411_vm0, %v1555_v43, %v1553_v16  ;;  %v700_v43 = vadd.f32 %v1559_v48, %v1547_v47 }
 0x16c   : > { %v636_v11 = vadd.f32 %v619_v41, %v1525_v27 }
 0x16d   : > { %v739_v12 = vpop.permute.xlu0 %738  ;;  %v737_v20 = vpop.permute.xlu1 %736 }
 0x16e   : > { %v748_v61 = vsel %vm674_vm1, %v735_v13, %v737_v20 }
 0x16f   : > { %v765_v50 = vadd.f32 %v748_v61, %v633_v34 }
 0x171   : > { %v1561_v9 = vpop.permute.xlu0 %742  ;;  %v1563_v19 = vpop.permute.xlu1 %740 }
 0x172   : > { %v750_v49 = vsel %vm674_vm1, %v739_v12, %v1563_v19  ;;  %v751_v53 = vsel %vm674_vm1, %v1563_v19, %v1561_v9 }
 0x173   : > { %v768_v18 = vadd.f32 %v751_v53, %v636_v11 }
 0x175   : > { %v791_v26 = vpop.permute.xlu0 %790  ;;  %v789_v33 = vpop.permute.xlu1 %788 }
 0x176   : > { %v806_v31 = vsel %vm674_vm1, %v789_v33, %v791_v26  ;;  %v697_v33 = vadd.f32 %v680_v40, %v1542_v7 }
 0x177   : > { %v1575_v38 = vadd.f32 %v806_v31, %v692_v0 }
 0x179   : > { %v832_v59 = vmax.f32 %v1573_v6, %v1575_v38  ;;  %v795_v15 = vpop.permute.xlu0 %794  ;;  %v793_v17 = vpop.permute.xlu1 %792 }
 0x17a   : > { %v807_v22 = vsel %vm674_vm1, %v791_v26, %v793_v17  ;;  %v808_v23 = vsel %vm674_vm1, %v793_v17, %v795_v15  ;;  %v749_v26 = vsel %vm674_vm1, %v737_v20, %v739_v12  ;;  %v767_v20 = vadd.f32 %v750_v49, %v635_v3 }
 0x17b   : > { %v824_v32 = vadd.f32 %v807_v22, %v693_v39  ;;  %v825_v44 = vadd.f32 %v808_v23, %v694_v52  ;;  %v766_v7 = vadd.f32 %v749_v26, %v634_v2  ;;  %v769_v17 = vadd.f32 %v1561_v9, %v637_v35 }
 0x17d   : > { %v833_v56 = vmax.f32 %v762_v10, %v824_v32  ;;  %v834_v62 = vmax.f32 %v763_v54, %v825_v44  ;;  %v799_v21 = vpop.permute.xlu0 %798  ;;  %v797_v24 = vpop.permute.xlu1 %796 }
 0x17e   : > { %v809_v25 = vsel %vm674_vm1, %v795_v15, %v797_v24  ;;  %v810_v46 = vsel %vm674_vm1, %v797_v24, %v799_v21 }
 0x17f   : > { %v826_v13 = vadd.f32 %v809_v25, %v695_v55  ;;  %v827_v0 = vadd.f32 %v810_v46, %v696_v57 }
 0x181   : > { %v835_v29 = vmax.f32 %v764_v5, %v826_v13  ;;  %v836_v36 = vmax.f32 %v765_v50, %v827_v0  ;;  %v803_v31 = vpop.permute.xlu0 %802  ;;  %v801_v30 = vpop.permute.xlu1 %800 }
 0x182   : > { %v811_v28 = vsel %vm674_vm1, %v799_v21, %v801_v30  ;;  %v812_v12 = vsel %vm674_vm1, %v801_v30, %v803_v31 }
 0x183   : > { %v828_v37 = vadd.f32 %v811_v28, %v697_v33  ;;  %v829_v42 = vadd.f32 %v812_v12, %v698_v60 }
 0x185   : > { %v837_v39 = vmax.f32 %v766_v7, %v828_v37  ;;  %v838_v52 = vmax.f32 %v767_v20, %v829_v42  ;;  %v805_v15 = vpop.permute.xlu1 %804 }
 0x186   : > { %v813_v8 = vsel %vm674_vm1, %v803_v31, %v805_v15  ;;  %v831_v16 = vadd.f32 %v805_v15, %v700_v43 }
 0x187   : > { %v830_v47 = vadd.f32 %v813_v8, %v699_v14 }
 0x188   : > { %v840_v48 = vmax.f32 %v769_v17, %v831_v16 }
 0x189   : > { %v839_v58 = vmax.f32 %v768_v18, %v830_v47 }
 0x18e   : > { %v845_v27 = vpop.permute.xlu0 %844 }
 0x18f   : > { %v847_v51 = vadd.f32 %v845_v27, %v832_v59  ;;  %v848_v19 = vadd.f32 %v845_v27, %v833_v56  ;;  %v849_v22 = vadd.f32 %v845_v27, %v834_v62  ;;  %v850_v23 = vadd.f32 %v845_v27, %v835_v29 }
 0x190   : > { %v851_v9 = vadd.f32 %v845_v27, %v836_v36  ;;  %v852_v10 = vadd.f32 %v845_v27, %v837_v39  ;;  %v853_v54 = vadd.f32 %v845_v27, %v838_v52  ;;  %v854_v32 = vadd.f32 %v845_v27, %v839_v58 }
 0x191   : > { %v855_v44 = vadd.f32 %v845_v27, %v840_v48  ;;  %v856_v34 = vmax.f32 %v847_v51, 0.0  ;;  %v857_v1 = vmax.f32 %v848_v19, 0.0  ;;  %v858_v45 = vmax.f32 %v849_v22, 0.0 }
 0x192   : > { %v859_v61 = vmax.f32 %v850_v23, 0.0  ;;  %v860_v55 = vmax.f32 %v851_v9, 0.0  ;;  %v861_v57 = vmax.f32 %v852_v10, 0.0  ;;  %v862_v6 = vmax.f32 %v853_v54, 0.0 }
 0x193   : > { %v863_v38 = vmax.f32 %v854_v32, 0.0  ;;  %v864_v59 = vmax.f32 %v855_v44, 0.0  ;;  %865 = vst [vmem:[%s201_s9] sm:$0xff] %v856_v34  ;;  %866 = vst [vmem:[%s201_s9 + $0x8] sm:$0xff] %v857_v1 }
 0x194   : > { %867 = vst [vmem:[%s201_s9 + $0x10] sm:$0xff] %v858_v45  ;;  %868 = vst [vmem:[%s201_s9 + $0x18] sm:$0xff] %v859_v61 }
 0x195   : > { %869 = vst [vmem:[%s201_s9 + $0x20] sm:$0xff] %v860_v55  ;;  %870 = vst [vmem:[%s201_s9 + $0x28] sm:$0xff] %v861_v57 }
 0x196   : > { %871 = vst [vmem:[%s201_s9 + $0x30] sm:$0xff] %v862_v6  ;;  %872 = vst [vmem:[%s201_s9 + $0x38] sm:$0xff] %v863_v38 }
 0x197   : > { %874 = vst.msk [vmem:[%s201_s9 + $0x40] sm:$0xff] %vm873_vm2, %v864_v59 }
 0x198   : > { %1034 = shalt.err (!%p1031_p3)
}
 0x199   : > { %s1035_s27 = scalar_lea.hbm %s1638_s12, 1152  ;;  %s1039_s30 = scalar_lea.hbm %s1686_s4, 2304 }
 0x19a   : > { %p1036_p4 = scmp.ne.s32.totalorder %s1638_s12, %s1035_s27  ;;  %p1040_p9 = scmp.lt.s32.totalorder %s1638_s12, %s1686_s4 }
 0x19b   : > { %p1041_p10 = scmp.lt.s32.totalorder %s1039_s30, %s1035_s27 }
 0x19c   : > { %p1037_p7 = pnand %p1036_p4, %p1150_p5 }
 0x19d   : > { %p1042_p11 = por %p1041_p10, %p1040_p9 }
 0x19e   : > { %p1038_p8 = pneg %p1037_p7 }
 0x1a0   : > { %p1043_p12 = pnand %p1042_p11, %p1038_p8 }
 0x1a2   : > { %1046 = shalt.err (!%p1043_p12)
}
 0x1a3   : > { %977 = dma.vmem_to_hbm [thread:$0]  (%p1150_p5), %s1640_s10, 1152, %s1638_s12, %s876_s13  }
 0x1a4 PF: > { %p983_p13 = scmp.ge.s32.totalorder %s1081_s18, 2  ;;  %s902_s7 = sand.u32 1, %s1069_s15  }
 0x1a5   : > { %s903_s8 = scalar_lea.sflag [#allocation3], %s902_s7 }
 0x1a6   : > { %p980_p0 = pnand %p983_p13, %p1154_p6 }
 0x1a8   : > { %p981_p1 = pneg %p980_p0 }
 0x1aa   : > { %1064 = dma.done.wait (%p981_p1), %s903_s8, 1152  }
 0x1ab   : > { %1066 = vsyncadd (%p981_p1), %s903_s8, 4294966144  ;;  %p14_p2 = scmp.ge.s32.totalorder %s1137_s21, 4   ;;  %s1689_s15 = smov %s1073_s16 }
 0x1ac   : > { %s1690_s16 = smov %s1077_s17  ;;  %s1691_s17 = smov %s1148_s24 }
 0x1ad   : > { %s1692_s18 = smov %s1137_s21  ;;  %16 = sbr.rel (!%p14_p2) target bundleno = 3 (0x3), region = 78 }
 0x1b2   :  { %908 = vsyncpa [#allocation3], 1 }
 0x1b3   :  { %910 = vsyncpa [#allocation3 + $0x1], 1 }

</bundles_post_ra>
